<compile_context>
chip_gen: v6e
topology: v6e:2x2x1
jax: 0.10.0
libtpu: 0.0.40
codegen_flags: <defaults>
</compile_context>

<pallas_src>
import functools

import jax
import jax.numpy as jnp
from jax import lax
from jax.experimental import pallas as pl
from jax.experimental.pallas import tpu as pltpu

_LANE = 128      # vreg lane width  -> feature dims padded to multiples of this
_SUBLANE = 8     # vreg sublane width -> batch padded to multiples of this


def _round_up(v, m):
    return ((v + m - 1) // m) * m


def _pad2d(a, rows, cols):
    pr, pc = rows - a.shape[0], cols - a.shape[1]
    if pr or pc:
        a = jnp.pad(a, ((0, pr), (0, pc)))
    return a


def _dnn_kernel(x_ref, w1_ref, b1_ref, w2_ref, b2_ref,
                w3_ref, b3_ref, w4_ref, b4_ref, noise_ref,
                out_ref, *, if_relu, scale):
    """enc_fc1 -> activ -> enc_fc2 -> row-wise power norm -> +noise
       -> dec_fc1 -> activ -> dec_fc2, fully fused on one batch tile."""

    def activ(v):
        return jnp.maximum(v, 0.0) if if_relu else jnp.tanh(v)

    x = x_ref[...]

    # Encoder (padded weight rows/cols are zero -> identical to unpadded math).
    h = activ(jnp.dot(x, w1_ref[...], preferred_element_type=jnp.float32)
              + b1_ref[...])
    z = jnp.dot(h, w2_ref[...], preferred_element_type=jnp.float32) + b2_ref[...]

    # Power constraint: sqrt(n) * sqrt(0.5) * z / ||z||_2 per row.
    # rsqrt runs on the EUP; eps guard prevents NaN on all-zero padding rows.
    sumsq = jnp.sum(z * z, axis=1, keepdims=True)
    inv_norm = lax.rsqrt(jnp.maximum(sumsq, 1e-12))
    z = (scale * inv_norm) * z

    # Channel noise (pre-sampled in the wrapper, one row per batch element).
    z = z + noise_ref[...]

    # Decoder
    d = activ(jnp.dot(z, w3_ref[...], preferred_element_type=jnp.float32)
              + b3_ref[...])
    y = jnp.dot(d, w4_ref[...], preferred_element_type=jnp.float32) + b4_ref[...]

    out_ref[...] = y.astype(out_ref.dtype)


def basic_dnn_forward(x, params, noise, *, if_relu=True, batch_tile=256):
    """x: [B, M] f32; noise: [B, n] f32; params: transposed weights w1..w4 and
    biases b1..b4 (shape [1, out])."""
    B, M = x.shape
    E = params["w1"].shape[1]
    N = params["w2"].shape[1]
    D = params["w3"].shape[1]

    # Lane-dense padding of every feature dim.
    Mp, Ep, Np, Dp = (_round_up(d, _LANE) for d in (M, E, N, D))

    # Batch: pad to a sublane multiple, then to a whole number of batch tiles.
    Bp = _round_up(B, _SUBLANE)
    tb = min(batch_tile, Bp)
    Bp = _round_up(Bp, tb)
    nb = Bp // tb

    xp = _pad2d(x, Bp, Mp)
    noise_p = _pad2d(noise, Bp, Np)
    w1 = _pad2d(params["w1"], Mp, Ep); b1 = _pad2d(params["b1"], 1, Ep)
    w2 = _pad2d(params["w2"], Ep, Np); b2 = _pad2d(params["b2"], 1, Np)
    w3 = _pad2d(params["w3"], Np, Dp); b3 = _pad2d(params["b3"], 1, Dp)
    w4 = _pad2d(params["w4"], Dp, Mp); b4 = _pad2d(params["b4"], 1, Mp)

    operands = (xp, w1, b1, w2, b2, w3, b3, w4, b4, noise_p)

    # scale uses the ORIGINAL bottleneck width (z.shape[1] in the PyTorch code).
    kernel = functools.partial(_dnn_kernel, if_relu=if_relu,
                               scale=float((N ** 0.5) * (0.5 ** 0.5)))

    flops = 2 * Bp * (Mp * Ep + Ep * Np + Np * Dp + Dp * Mp)
    transc = Bp * (1 if if_relu else (1 + Ep + Dp))   # rsqrt (+ tanh)
    bytes_accessed = (sum(int(a.size) * a.dtype.itemsize for a in operands)
                      + Bp * Mp * 4)
    cost = pl.CostEstimate(flops=flops, transcendentals=transc,
                           bytes_accessed=bytes_accessed)

    if nb == 1:
        # Single batch tile: no grid, no pipeline double-buffering; all
        # operands are placed directly in VMEM once.
        vmem = pl.BlockSpec(memory_space=pltpu.MemorySpace.VMEM)
        out_p = pl.pallas_call(
            kernel,
            out_shape=jax.ShapeDtypeStruct((Bp, Mp), jnp.float32),
            in_specs=[vmem] * len(operands),
            out_specs=vmem,
            cost_estimate=cost,
        )(*operands)
    else:
        # Stream batch tiles; weights/biases keep a constant block index so
        # they stay VMEM-resident across grid steps (fetched once).
        def batch_spec(cols):
            return pl.BlockSpec((tb, cols), lambda i: (i, 0))

        def resident_spec(a):
            return pl.BlockSpec(a.shape, lambda i: (0, 0))

        out_p = pl.pallas_call(
            kernel,
            out_shape=jax.ShapeDtypeStruct((Bp, Mp), jnp.float32),
            grid=(nb,),
            in_specs=[batch_spec(Mp),
                      resident_spec(w1), resident_spec(b1),
                      resident_spec(w2), resident_spec(b2),
                      resident_spec(w3), resident_spec(b3),
                      resident_spec(w4), resident_spec(b4),
                      batch_spec(Np)],
            out_specs=batch_spec(Mp),
            compiler_params=pltpu.CompilerParams(
                dimension_semantics=("parallel",)),
            cost_estimate=cost,
        )(*operands)

    return out_p[:B, :M]


def init_params(key, M, num_neurons_encoder, n, num_neurons_decoder, if_bias):
    """Deterministic init matching nn.Linear shapes (weights stored transposed)."""
    keys = jax.random.split(key, 8)

    def linear(kw, kb, fan_in, fan_out):
        bound = 1.0 / (fan_in ** 0.5)
        w = jax.random.uniform(kw, (fan_in, fan_out), jnp.float32, -bound, bound)
        if if_bias:
            b = jax.random.uniform(kb, (1, fan_out), jnp.float32, -bound, bound)
        else:
            b = jnp.zeros((1, fan_out), jnp.float32)
        return w, b

    w1, b1 = linear(keys[0], keys[1], M, num_neurons_encoder)
    w2, b2 = linear(keys[2], keys[3], num_neurons_encoder, n)
    w3, b3 = linear(keys[4], keys[5], n, num_neurons_decoder)
    w4, b4 = linear(keys[6], keys[7], num_neurons_decoder, M)
    return dict(w1=w1, b1=b1, w2=w2, b2=b2, w3=w3, b3=b3, w4=w4, b4=b4)


def _reference_forward(x, params, noise, if_relu=True):
    """Pure-JAX reference for correctness checking (matches PyTorch forward)."""
    activ = (lambda v: jnp.maximum(v, 0.0)) if if_relu else jnp.tanh
    h = activ(x @ params["w1"] + params["b1"])
    z = h @ params["w2"] + params["b2"]
    z_norm = jnp.linalg.norm(z, axis=1, keepdims=True)
    z = (z.shape[1] ** 0.5) * (0.5 ** 0.5) * z / z_norm
    z = z + noise
    d = activ(z @ params["w3"] + params["b3"])
    return d @ params["w4"] + params["b4"]


if __name__ == "__main__":
    # Small shapes consistent with the module's forward:
    # M (in/out dim) = 16, encoder hidden = 32, bottleneck n = 8, decoder hidden = 32.
    M, H_ENC, N_BOTTLE, H_DEC = 16, 32, 8, 32
    IF_BIAS, IF_RELU = True, True

    key = jax.random.PRNGKey(0)
    k_param, k_x, k_noise, k_x2, k_noise2 = jax.random.split(key, 5)
    params = init_params(k_param, M, H_ENC, N_BOTTLE, H_DEC, IF_BIAS)

    fwd_single = jax.jit(functools.partial(basic_dnn_forward, if_relu=IF_RELU))
    fwd_grid = jax.jit(functools.partial(basic_dnn_forward, if_relu=IF_RELU,
                                         batch_tile=8))

    # ---- case 1: tiny batch (single-tile, grid-free VMEM path) ----
    B = 2
    x = jax.random.normal(k_x, (B, M), dtype=jnp.float32)
    # TODO(synk): torch noise_dist.sample() (per-row) has no Pallas equivalent;
    # noise is pre-sampled here and added inside the kernel.
    noise = 0.1 * jax.random.normal(k_noise, (B, N_BOTTLE), dtype=jnp.float32)

    out = jax.block_until_ready(fwd_single(x, params, noise))
    ref = _reference_forward(x, params, noise, if_relu=IF_RELU)
    assert out.shape == (B, M)
    assert jnp.allclose(out, ref, atol=1e-5, rtol=1e-5)

    # ---- case 2: larger batch exercising the gridded (weights-resident) path ----
    B2 = 24
    x2 = jax.random.normal(k_x2, (B2, M), dtype=jnp.float32)
    noise2 = 0.1 * jax.random.normal(k_noise2, (B2, N_BOTTLE), dtype=jnp.float32)
    out2 = jax.block_until_ready(fwd_grid(x2, params, noise2))
    ref2 = _reference_forward(x2, params, noise2, if_relu=IF_RELU)
    assert out2.shape == (B2, M)
    assert jnp.allclose(out2, ref2, atol=1e-5, rtol=1e-5)

    print("KERNEL_OK")
</pallas_src>

<mosaic_0001>
module attributes {stable_mosaic.version = 11 : i64} {
  func.func @_dnn_kernel(%arg0: memref<8x128xf32, #tpu.memory_space<vmem>>, %arg1: memref<128x128xf32, #tpu.memory_space<vmem>>, %arg2: memref<1x128xf32, #tpu.memory_space<vmem>>, %arg3: memref<128x128xf32, #tpu.memory_space<vmem>>, %arg4: memref<1x128xf32, #tpu.memory_space<vmem>>, %arg5: memref<128x128xf32, #tpu.memory_space<vmem>>, %arg6: memref<1x128xf32, #tpu.memory_space<vmem>>, %arg7: memref<128x128xf32, #tpu.memory_space<vmem>>, %arg8: memref<1x128xf32, #tpu.memory_space<vmem>>, %arg9: memref<8x128xf32, #tpu.memory_space<vmem>>, %arg10: memref<8x128xf32, #tpu.memory_space<vmem>>) attributes {dimension_semantics = [], scalar_prefetch = 0 : i64, scratch_operands = 0 : i64, tpu.core_type = #tpu.core_type<tc>} {
    %c0 = arith.constant 0 : index
    %c0_0 = arith.constant 0 : index
    %0 = vector.load %arg0[%c0, %c0_0] : memref<8x128xf32, #tpu.memory_space<vmem>>, vector<8x128xf32>
    %c0_1 = arith.constant 0 : index
    %c0_2 = arith.constant 0 : index
    %1 = vector.load %arg1[%c0_1, %c0_2] : memref<128x128xf32, #tpu.memory_space<vmem>>, vector<128x128xf32>
    %cst = arith.constant dense<0.000000e+00> : vector<8x128xf32>
    %2 = tpu.matmul %0, %1, %cst {dimension_numbers = #tpu.dot_dimension_numbers<[1], [0], [0], [1], [0, 0, 1, 1], [], []>} : vector<8x128xf32>, vector<128x128xf32>, vector<8x128xf32> -> vector<8x128xf32>
    %c0_3 = arith.constant 0 : index
    %c0_4 = arith.constant 0 : index
    %3 = vector.load %arg2[%c0_3, %c0_4] : memref<1x128xf32, #tpu.memory_space<vmem>>, vector<1x128xf32>
    %4 = vector.broadcast %3 : vector<1x128xf32> to vector<8x128xf32>
    %5 = arith.addf %2, %4 : vector<8x128xf32>
    %cst_5 = arith.constant 0.000000e+00 : f32
    %6 = vector.broadcast %cst_5 : f32 to vector<8x128xf32>
    %7 = arith.maximumf %5, %6 : vector<8x128xf32>
    %c0_6 = arith.constant 0 : index
    %c0_7 = arith.constant 0 : index
    %8 = vector.load %arg3[%c0_6, %c0_7] : memref<128x128xf32, #tpu.memory_space<vmem>>, vector<128x128xf32>
    %cst_8 = arith.constant dense<0.000000e+00> : vector<8x128xf32>
    %9 = tpu.matmul %7, %8, %cst_8 {dimension_numbers = #tpu.dot_dimension_numbers<[1], [0], [0], [1], [0, 0, 1, 1], [], []>} : vector<8x128xf32>, vector<128x128xf32>, vector<8x128xf32> -> vector<8x128xf32>
    %c0_9 = arith.constant 0 : index
    %c0_10 = arith.constant 0 : index
    %10 = vector.load %arg4[%c0_9, %c0_10] : memref<1x128xf32, #tpu.memory_space<vmem>>, vector<1x128xf32>
    %11 = vector.broadcast %10 : vector<1x128xf32> to vector<8x128xf32>
    %12 = arith.addf %9, %11 : vector<8x128xf32>
    %13 = arith.mulf %12, %12 : vector<8x128xf32>
    %cst_11 = arith.constant dense<0.000000e+00> : vector<8xf32>
    %14 = vector.multi_reduction <add>, %13, %cst_11 [1] : vector<8x128xf32> to vector<8xf32>
    %15 = vector.shape_cast %14 : vector<8xf32> to vector<8x1xf32>
    %cst_12 = arith.constant 9.99999996E-13 : f32
    %16 = vector.broadcast %cst_12 : f32 to vector<8x1xf32>
    %17 = arith.maximumf %15, %16 : vector<8x1xf32>
    %18 = math.rsqrt %17 : vector<8x1xf32>
    %cst_13 = arith.constant 2.000000e+00 : f32
    %19 = vector.broadcast %cst_13 : f32 to vector<8x1xf32>
    %20 = arith.mulf %19, %18 : vector<8x1xf32>
    %21 = vector.broadcast %20 : vector<8x1xf32> to vector<8x128xf32>
    %22 = arith.mulf %21, %12 : vector<8x128xf32>
    %c0_14 = arith.constant 0 : index
    %c0_15 = arith.constant 0 : index
    %23 = vector.load %arg9[%c0_14, %c0_15] : memref<8x128xf32, #tpu.memory_space<vmem>>, vector<8x128xf32>
    %24 = arith.addf %22, %23 : vector<8x128xf32>
    %c0_16 = arith.constant 0 : index
    %c0_17 = arith.constant 0 : index
    %25 = vector.load %arg5[%c0_16, %c0_17] : memref<128x128xf32, #tpu.memory_space<vmem>>, vector<128x128xf32>
    %cst_18 = arith.constant dense<0.000000e+00> : vector<8x128xf32>
    %26 = tpu.matmul %24, %25, %cst_18 {dimension_numbers = #tpu.dot_dimension_numbers<[1], [0], [0], [1], [0, 0, 1, 1], [], []>} : vector<8x128xf32>, vector<128x128xf32>, vector<8x128xf32> -> vector<8x128xf32>
    %c0_19 = arith.constant 0 : index
    %c0_20 = arith.constant 0 : index
    %27 = vector.load %arg6[%c0_19, %c0_20] : memref<1x128xf32, #tpu.memory_space<vmem>>, vector<1x128xf32>
    %28 = vector.broadcast %27 : vector<1x128xf32> to vector<8x128xf32>
    %29 = arith.addf %26, %28 : vector<8x128xf32>
    %cst_21 = arith.constant 0.000000e+00 : f32
    %30 = vector.broadcast %cst_21 : f32 to vector<8x128xf32>
    %31 = arith.maximumf %29, %30 : vector<8x128xf32>
    %c0_22 = arith.constant 0 : index
    %c0_23 = arith.constant 0 : index
    %32 = vector.load %arg7[%c0_22, %c0_23] : memref<128x128xf32, #tpu.memory_space<vmem>>, vector<128x128xf32>
    %cst_24 = arith.constant dense<0.000000e+00> : vector<8x128xf32>
    %33 = tpu.matmul %31, %32, %cst_24 {dimension_numbers = #tpu.dot_dimension_numbers<[1], [0], [0], [1], [0, 0, 1, 1], [], []>} : vector<8x128xf32>, vector<128x128xf32>, vector<8x128xf32> -> vector<8x128xf32>
    %c0_25 = arith.constant 0 : index
    %c0_26 = arith.constant 0 : index
    %34 = vector.load %arg8[%c0_25, %c0_26] : memref<1x128xf32, #tpu.memory_space<vmem>>, vector<1x128xf32>
    %35 = vector.broadcast %34 : vector<1x128xf32> to vector<8x128xf32>
    %36 = arith.addf %33, %35 : vector<8x128xf32>
    %c0_27 = arith.constant 0 : index
    %c0_28 = arith.constant 0 : index
    %37 = vector.load %arg10[%c0_27, %c0_28] : memref<8x128xf32, #tpu.memory_space<vmem>>, vector<8x128xf32>
    tpu.vector_store %arg10[%c0_27, %c0_28], %36 {strides = array<i32>} : memref<8x128xf32, #tpu.memory_space<vmem>>, vector<8x128xf32>,
    return
  }
}

</mosaic_0001>

<bundles_post_ra>
// kernel: basic_dnn_forward.1
= control target key start
LH: loop header
LB: loop body
LE: loop exit
PB: predicated region body
PF: predicated region fallthrough
CT: control target
= control target key end

     0   :  { %v640_v0 = vmov 0.0   ;;  %vm641_vm0 = vmmov 0   ;;  %s987_s1 = inlined_call_operand.vmem [shape: f32[128,128], index: 1, kind: input, shape index: {}]   ;;  %s988_s3 = inlined_call_operand.vmem [shape: f32[128,128], index: 3, kind: input, shape index: {}]   ;;  %s989_s0 = inlined_call_operand.vmem [shape: f32[8,128], index: 0, kind: input, shape index: {}]   ;;  %s990_s2 = inlined_call_operand.vmem [shape: f32[1,128], index: 2, kind: input, shape index: {}]   ;;  %s991_s5 = inlined_call_operand.vmem [shape: f32[128,128], index: 5, kind: input, shape index: {}]   ;;  %s992_s4 = inlined_call_operand.vmem [shape: f32[1,128], index: 4, kind: input, shape index: {}]   ;;  %s993_s7 = inlined_call_operand.vmem [shape: f32[128,128], index: 7, kind: input, shape index: {}]   ;;  %s994_s9 = inlined_call_operand.vmem [shape: f32[8,128], index: 9, kind: input, shape index: {}]   ;;  %s995_s6 = inlined_call_operand.vmem [shape: f32[1,128], index: 6, kind: input, shape index: {}]   ;;  %s996_s8 = inlined_call_operand.vmem [shape: f32[1,128], index: 8, kind: input, shape index: {}]   ;;  %s997_s10 = inlined_call_operand.vmem [shape: f32[8,128], index: 10, kind: output, shape index: {}]  }
   0x1   :  { %496 = vmatprep.subr.mxu0 %v640_v0  ;;  %v51_v1 = vld [vmem:[%s987_s1 + $0x78] sm:$0xff]  ;;  %v50_v2 = vld [vmem:[%s987_s1 + $0x70] sm:$0xff]  ;;  %528 = vmatprep.mubr.msk.f32.mxu0 %vm641_vm0, %v640_v0  ;;  %v49_v3 = vld [vmem:[%s987_s1 + $0x68] sm:$0xff] }
   0x2   :  { %497 = vmatpush3.msra.mxu0 %v51_v1  ;;  %531 = vmatprep.subr.mxu1 %v640_v0  ;;  %v48_v4 = vld [vmem:[%s987_s1 + $0x60] sm:$0xff]  ;;  %v145_v5 = vld [vmem:[%s988_s3 + $0x78] sm:$0xff]  ;;  %v144_v7 = vld [vmem:[%s988_s3 + $0x70] sm:$0xff] }
   0x3   :  { %498 = vmatprep.subr.mxu0 %v640_v0  ;;  %563 = vmatprep.mubr.msk.f32.mxu1 %vm641_vm0, %v640_v0  ;;  %v47_v6 = vld [vmem:[%s987_s1 + $0x58] sm:$0xff]  ;;  %v143_v8 = vld [vmem:[%s988_s3 + $0x68] sm:$0xff]  ;;  %v46_v9 = vld [vmem:[%s987_s1 + $0x50] sm:$0xff] }
   0x4   :  { %499 = vmatpush3.msra.mxu0 %v50_v2  ;;  %532 = vmatpush3.msra.mxu1 %v145_v5  ;;  %v142_v10 = vld [vmem:[%s988_s3 + $0x60] sm:$0xff]  ;;  %v45_v11 = vld [vmem:[%s987_s1 + $0x48] sm:$0xff]  ;;  %v141_v12 = vld [vmem:[%s988_s3 + $0x58] sm:$0xff] }
   0x5   :  { %500 = vmatprep.subr.mxu0 %v640_v0  ;;  %533 = vmatprep.subr.mxu1 %v640_v0  ;;  %v44_v13 = vld [vmem:[%s987_s1 + $0x40] sm:$0xff]  ;;  %v140_v14 = vld [vmem:[%s988_s3 + $0x50] sm:$0xff]  ;;  %v43_v15 = vld [vmem:[%s987_s1 + $0x38] sm:$0xff] }
   0x6   :  { %501 = vmatpush3.msra.mxu0 %v49_v3  ;;  %534 = vmatpush3.msra.mxu1 %v144_v7  ;;  %v139_v16 = vld [vmem:[%s988_s3 + $0x48] sm:$0xff]  ;;  %v42_v17 = vld [vmem:[%s987_s1 + $0x30] sm:$0xff]  ;;  %v138_v18 = vld [vmem:[%s988_s3 + $0x40] sm:$0xff] }
   0x7   :  { %502 = vmatprep.subr.mxu0 %v640_v0  ;;  %535 = vmatprep.subr.mxu1 %v640_v0  ;;  %v41_v19 = vld [vmem:[%s987_s1 + $0x28] sm:$0xff]  ;;  %v137_v20 = vld [vmem:[%s988_s3 + $0x38] sm:$0xff]  ;;  %v40_v21 = vld [vmem:[%s987_s1 + $0x20] sm:$0xff] }
   0x8   :  { %503 = vmatpush3.msra.mxu0 %v48_v4  ;;  %536 = vmatpush3.msra.mxu1 %v143_v8  ;;  %v136_v22 = vld [vmem:[%s988_s3 + $0x30] sm:$0xff]  ;;  %v39_v23 = vld [vmem:[%s987_s1 + $0x18] sm:$0xff]  ;;  %v135_v24 = vld [vmem:[%s988_s3 + $0x28] sm:$0xff] }
   0x9   :  { %504 = vmatprep.subr.mxu0 %v640_v0  ;;  %537 = vmatprep.subr.mxu1 %v640_v0  ;;  %v38_v25 = vld [vmem:[%s987_s1 + $0x10] sm:$0xff]  ;;  %v134_v26 = vld [vmem:[%s988_s3 + $0x20] sm:$0xff]  ;;  %v37_v27 = vld [vmem:[%s987_s1 + $0x8] sm:$0xff] }
   0xa   :  { %505 = vmatpush3.msra.mxu0 %v47_v6  ;;  %538 = vmatpush3.msra.mxu1 %v142_v10  ;;  %v133_v28 = vld [vmem:[%s988_s3 + $0x18] sm:$0xff]  ;;  %v36_v29 = vld [vmem:[%s987_s1] sm:$0xff]  ;;  %v132_v31 = vld [vmem:[%s988_s3 + $0x10] sm:$0xff] }
   0xb   :  { %506 = vmatprep.subr.mxu0 %v640_v0  ;;  %539 = vmatprep.subr.mxu1 %v640_v0  ;;  %v35_v30 = vld [vmem:[%s989_s0] sm:$0xff]  ;;  %v131_v32 = vld [vmem:[%s988_s3 + $0x8] sm:$0xff]  ;;  %v247_v39 = vld [vmem:[%s991_s5 + $0x78] sm:$0xff] }
   0xc   :  { %507 = vmatpush3.msra.mxu0 %v46_v9  ;;  %540 = vmatpush3.msra.mxu1 %v141_v12  ;;  %v130_v33 = vld [vmem:[%s988_s3] sm:$0xff]  ;;  %v246_v40 = vld [vmem:[%s991_s5 + $0x70] sm:$0xff]  ;;  %v245_v41 = vld [vmem:[%s991_s5 + $0x68] sm:$0xff] }
   0xd   :  { %508 = vmatprep.subr.mxu0 %v640_v0  ;;  %541 = vmatprep.subr.mxu1 %v640_v0  ;;  %v424_v34 = vld [vmem:[%s990_s2] ss:$0 sm:$0xff]  ;;  %v243_v48 = vld [vmem:[%s991_s5 + $0x58] sm:$0xff]  ;;  %v242_v49 = vld [vmem:[%s991_s5 + $0x50] sm:$0xff] }
   0xe   :  { %509 = vmatpush3.msra.mxu0 %v45_v11  ;;  %542 = vmatpush3.msra.mxu1 %v140_v14  ;;  %v244_v42 = vld [vmem:[%s991_s5 + $0x60] sm:$0xff]  ;;  %v241_v50 = vld [vmem:[%s991_s5 + $0x48] sm:$0xff]  ;;  %v239_v52 = vld [vmem:[%s991_s5 + $0x38] sm:$0xff] }
   0xf   :  { %510 = vmatprep.subr.mxu0 %v640_v0  ;;  %543 = vmatprep.subr.mxu1 %v640_v0  ;;  %v425_v43 = vld [vmem:[%s992_s4] ss:$0 sm:$0xff]  ;;  %v238_v53 = vld [vmem:[%s991_s5 + $0x30] sm:$0xff]  ;;  %v237_v54 = vld [vmem:[%s991_s5 + $0x28] sm:$0xff] }
  0x10   :  { %511 = vmatpush3.msra.mxu0 %v44_v13  ;;  %544 = vmatpush3.msra.mxu1 %v139_v16  ;;  %v240_v51 = vld [vmem:[%s991_s5 + $0x40] sm:$0xff]  ;;  %v235_v56 = vld [vmem:[%s991_s5 + $0x18] sm:$0xff]  ;;  %v234_v57 = vld [vmem:[%s991_s5 + $0x10] sm:$0xff] }
  0x11   :  { %512 = vmatprep.subr.mxu0 %v640_v0  ;;  %545 = vmatprep.subr.mxu1 %v640_v0  ;;  %v236_v55 = vld [vmem:[%s991_s5 + $0x20] sm:$0xff]  ;;  %v233_v58 = vld [vmem:[%s991_s5 + $0x8] sm:$0xff]  ;;  %v341_v60 = vld [vmem:[%s993_s7 + $0x78] sm:$0xff] }
  0x12   :  { %513 = vmatpush3.msra.mxu0 %v43_v15  ;;  %546 = vmatpush3.msra.mxu1 %v138_v18  ;;  %v232_v59 = vld [vmem:[%s991_s5] sm:$0xff]  ;;  %v340_v61 = vld [vmem:[%s993_s7 + $0x70] sm:$0xff]  ;;  %v339_v62 = vld [vmem:[%s993_s7 + $0x68] sm:$0xff] }
  0x13   :  { %514 = vmatprep.subr.mxu0 %v640_v0  ;;  %547 = vmatprep.subr.mxu1 %v640_v0  ;;  %v338_v63 = vld [vmem:[%s993_s7 + $0x60] sm:$0xff]  ;;  %v337_v1 = vld [vmem:[%s993_s7 + $0x58] sm:$0xff]  ;;  %v336_v2 = vld [vmem:[%s993_s7 + $0x50] sm:$0xff] }
  0x14   :  { %515 = vmatpush3.msra.mxu0 %v42_v17  ;;  %548 = vmatpush3.msra.mxu1 %v137_v20  ;;  %v335_v3 = vld [vmem:[%s993_s7 + $0x48] sm:$0xff]  ;;  %v334_v4 = vld [vmem:[%s993_s7 + $0x40] sm:$0xff]  ;;  %v333_v5 = vld [vmem:[%s993_s7 + $0x38] sm:$0xff] }
  0x15   :  { %516 = vmatprep.subr.mxu0 %v640_v0  ;;  %549 = vmatprep.subr.mxu1 %v640_v0  ;;  %v332_v6 = vld [vmem:[%s993_s7 + $0x30] sm:$0xff]  ;;  %v331_v7 = vld [vmem:[%s993_s7 + $0x28] sm:$0xff]  ;;  %v330_v8 = vld [vmem:[%s993_s7 + $0x20] sm:$0xff] }
  0x16   :  { %517 = vmatpush3.msra.mxu0 %v41_v19  ;;  %550 = vmatpush3.msra.mxu1 %v136_v22  ;;  %v329_v9 = vld [vmem:[%s993_s7 + $0x18] sm:$0xff]  ;;  %v230_v14 = vld [vmem:[%s994_s9] sm:$0xff]  ;;  %v328_v17 = vld [vmem:[%s993_s7 + $0x10] sm:$0xff] }
  0x17   :  { %518 = vmatprep.subr.mxu0 %v640_v0  ;;  %551 = vmatprep.subr.mxu1 %v640_v0  ;;  %v327_v18 = vld [vmem:[%s993_s7 + $0x8] sm:$0xff]  ;;  %v326_v19 = vld [vmem:[%s993_s7] sm:$0xff] }
  0x18   :  { %519 = vmatpush3.msra.mxu0 %v40_v21  ;;  %552 = vmatpush3.msra.mxu1 %v135_v24  ;;  %v426_v20 = vld [vmem:[%s995_s6] ss:$0 sm:$0xff] }
  0x19   :  { %520 = vmatprep.subr.mxu0 %v640_v0  ;;  %553 = vmatprep.subr.mxu1 %v640_v0 }
  0x1a   :  { %521 = vmatpush3.msra.mxu0 %v39_v23  ;;  %554 = vmatpush3.msra.mxu1 %v134_v26 }
  0x1b   :  { %522 = vmatprep.subr.mxu0 %v640_v0  ;;  %555 = vmatprep.subr.mxu1 %v640_v0 }
  0x1c   :  { %523 = vmatpush3.msra.mxu0 %v38_v25  ;;  %556 = vmatpush3.msra.mxu1 %v133_v28  ;;  %v427_v25 = vld [vmem:[%s996_s8] ss:$0 sm:$0xff] }
  0x1d   :  { %524 = vmatprep.subr.mxu0 %v640_v0  ;;  %557 = vmatprep.subr.mxu1 %v640_v0 }
  0x1e   :  { %525 = vmatpush3.msra.mxu0 %v37_v27  ;;  %558 = vmatpush3.msra.mxu1 %v132_v31 }
  0x1f   :  { %526 = vmatprep.subr.mxu0 %v640_v0  ;;  %559 = vmatprep.subr.mxu1 %v640_v0 }
  0x20   :  { %527 = vmatpush3.msra.mxu0 %v36_v29  ;;  %560 = vmatpush3.msra.mxu1 %v131_v32 }
  0x21   :  { %529 = vmatmul.mubr.f32.vlgmr.msra.gmra.mxu0 %v35_v30  ;;  %566 = vmatprep.subr.mxu0 %v640_v0 }
  0x22   :  { %598 = vmatprep.mubr.msk.f32.mxu0 %vm641_vm0, %v640_v0  ;;  %561 = vmatprep.subr.mxu1 %v640_v0 }
  0x23   :  { %562 = vmatpush3.msra.mxu1 %v130_v33  ;;  %567 = vmatpush3.msra.mxu0 %v247_v39 }
  0x24   :  { %601 = vmatprep.subr.mxu1 %v640_v0  ;;  %568 = vmatprep.subr.mxu0 %v640_v0 }
  0x25   :  { %569 = vmatpush3.msra.mxu0 %v246_v40 }
  0x26   :  { %570 = vmatprep.subr.mxu0 %v640_v0 }
  0x27   :  { %571 = vmatpush3.msra.mxu0 %v245_v41 }
  0x28   :  { %572 = vmatprep.subr.mxu0 %v640_v0 }
  0x29   :  { %573 = vmatpush3.msra.mxu0 %v244_v42 }
  0x2a   :  { %574 = vmatprep.subr.mxu0 %v640_v0 }
  0x2b   :  { %575 = vmatpush3.msra.mxu0 %v243_v48 }
  0x2c   :  { %576 = vmatprep.subr.mxu0 %v640_v0 }
  0x2d   :  { %577 = vmatpush3.msra.mxu0 %v242_v49 }
  0x2e   :  { %578 = vmatprep.subr.mxu0 %v640_v0 }
  0x2f   :  { %579 = vmatpush3.msra.mxu0 %v241_v50 }
  0x30   :  { %580 = vmatprep.subr.mxu0 %v640_v0 }
  0x31   :  { %581 = vmatpush3.msra.mxu0 %v240_v51 }
  0x32   :  { %582 = vmatprep.subr.mxu0 %v640_v0 }
  0x33   :  { %583 = vmatpush3.msra.mxu0 %v239_v52 }
  0x34   :  { %584 = vmatprep.subr.mxu0 %v640_v0 }
  0x35   :  { %585 = vmatpush3.msra.mxu0 %v238_v53 }
  0x36   :  { %586 = vmatprep.subr.mxu0 %v640_v0 }
  0x37   :  { %587 = vmatpush3.msra.mxu0 %v237_v54 }
  0x38   :  { %588 = vmatprep.subr.mxu0 %v640_v0 }
  0x39   :  { %589 = vmatpush3.msra.mxu0 %v236_v55 }
  0x3a   :  { %590 = vmatprep.subr.mxu0 %v640_v0 }
  0x3b   :  { %591 = vmatpush3.msra.mxu0 %v235_v56 }
  0x3c   :  { %592 = vmatprep.subr.mxu0 %v640_v0 }
  0x3d   :  { %593 = vmatpush3.msra.mxu0 %v234_v57 }
  0x3e   :  { %594 = vmatprep.subr.mxu0 %v640_v0 }
  0x3f   :  { %595 = vmatpush3.msra.mxu0 %v233_v58 }
  0x40   :  { %596 = vmatprep.subr.mxu0 %v640_v0 }
  0x41   :  { %597 = vmatpush3.msra.mxu0 %v232_v59 }
  0xe1   :  { %v125_v35 = vpop.f32.mrf.mxu0 }
  0xe2   :  { %v126_v36 = vadd.f32 %v424_v34, %v125_v35 }
  0xe3   :  { %v530_v37 = vpop.f32.mrf.mxu0 }
  0xe4   :  { %v129_v38 = vmax.f32 %v126_v36, 0.0 }
  0xe6   :  { %564 = vmatmul.mubr.f32.vlgmr.msra.gmra.mxu1 %v129_v38 }
  0xe7   :  { %633 = vmatprep.mubr.msk.f32.mxu1 %vm641_vm0, %v640_v0  ;;  %602 = vmatpush3.msra.mxu1 %v341_v60 }
  0xe8   :  { %603 = vmatprep.subr.mxu1 %v640_v0 }
  0xe9   :  { %604 = vmatpush3.msra.mxu1 %v340_v61 }
  0xea   :  { %605 = vmatprep.subr.mxu1 %v640_v0 }
  0xeb   :  { %606 = vmatpush3.msra.mxu1 %v339_v62 }
  0xec   :  { %607 = vmatprep.subr.mxu1 %v640_v0 }
  0xed   :  { %608 = vmatpush3.msra.mxu1 %v338_v63 }
  0xee   :  { %609 = vmatprep.subr.mxu1 %v640_v0 }
  0xef   :  { %610 = vmatpush3.msra.mxu1 %v337_v1 }
  0xf0   :  { %611 = vmatprep.subr.mxu1 %v640_v0 }
  0xf1   :  { %612 = vmatpush3.msra.mxu1 %v336_v2 }
  0xf2   :  { %613 = vmatprep.subr.mxu1 %v640_v0 }
  0xf3   :  { %614 = vmatpush3.msra.mxu1 %v335_v3 }
  0xf4   :  { %615 = vmatprep.subr.mxu1 %v640_v0 }
  0xf5   :  { %616 = vmatpush3.msra.mxu1 %v334_v4 }
  0xf6   :  { %617 = vmatprep.subr.mxu1 %v640_v0 }
  0xf7   :  { %618 = vmatpush3.msra.mxu1 %v333_v5 }
  0xf8   :  { %619 = vmatprep.subr.mxu1 %v640_v0 }
  0xf9   :  { %620 = vmatpush3.msra.mxu1 %v332_v6 }
  0xfa   :  { %621 = vmatprep.subr.mxu1 %v640_v0 }
  0xfb   :  { %622 = vmatpush3.msra.mxu1 %v331_v7 }
  0xfc   :  { %623 = vmatprep.subr.mxu1 %v640_v0 }
  0xfd   :  { %624 = vmatpush3.msra.mxu1 %v330_v8 }
  0xfe   :  { %625 = vmatprep.subr.mxu1 %v640_v0 }
  0xff   :  { %626 = vmatpush3.msra.mxu1 %v329_v9 }
 0x100   :  { %627 = vmatprep.subr.mxu1 %v640_v0 }
 0x101   :  { %628 = vmatpush3.msra.mxu1 %v328_v17 }
 0x102   :  { %629 = vmatprep.subr.mxu1 %v640_v0 }
 0x103   :  { %630 = vmatpush3.msra.mxu1 %v327_v18 }
 0x104   :  { %631 = vmatprep.subr.mxu1 %v640_v0 }
 0x105   :  { %632 = vmatpush3.msra.mxu1 %v326_v19 }
 0x1a6   :  { %v219_v44 = vpop.f32.mrf.mxu1 }
 0x1a7   :  { %v860_v45 = vadd.f32 %v425_v43, %v219_v44 }
 0x1a8   :  { %v565_v46 = vpop.f32.mrf.mxu1 }
 0x1a9   :  { %v223_v47 = vmul.f32 %v860_v45, %v860_v45 }
 0x1ab   :  { %224 = vadd.xlane.f32.xlu0 %v223_v47 }
 0x234   :  { %v225_v10 = vpop.xlane.xlu0 %224 }
 0x235   :  { %v226_v11 = vmax.f32 %v225_v10, 1e-12 }
 0x237   :  { %638 = vrsqrt.f32 %v226_v11 }
 0x244   :  { %v639_v12 = vpop.eup %638 }
 0x245   :  { %v228_v13 = vmul.f32 2.0, %v639_v12 }
 0x247   :  { %v229_v15 = vmul.f32 %v228_v13, %v860_v45 }
 0x249   :  { %v231_v16 = vadd.f32 %v230_v14, %v229_v15 }
 0x24b   :  { %599 = vmatmul.mubr.f32.vlgmr.msra.gmra.mxu0 %v231_v16 }
 0x30b   :  { %v321_v21 = vpop.f32.mrf.mxu0 }
 0x30c   :  { %v322_v22 = vadd.f32 %v426_v20, %v321_v21 }
 0x30d   :  { %v600_v23 = vpop.f32.mrf.mxu0 }
 0x30e   :  { %v325_v24 = vmax.f32 %v322_v22, 0.0 }
 0x310   :  { %634 = vmatmul.mubr.f32.vlgmr.msra.gmra.mxu1 %v325_v24 }
 0x3d0   :  { %v415_v26 = vpop.f32.mrf.mxu1 }
 0x3d1   :  { %v416_v0 = vadd.f32 %v427_v25, %v415_v26 }
 0x3d2   :  { %v635_v27 = vpop.f32.mrf.mxu1 }
 0x3d3   :  { %419 = vst [vmem:[%s997_s10] sm:$0xff] %v416_v0 }

</bundles_post_ra>
